<compile_context>
chip_gen: v7x
topology: tpu7x:2x2x1
jax: 0.10.0
libtpu: 0.0.40
codegen_flags: <defaults>
</compile_context>

<pallas_src>
import functools

import jax
import jax.numpy as jnp
from jax.experimental import pallas as pl
from jax.experimental.pallas import tpu as pltpu


def _ce_kernel(pred_ref, tgt_ref, loss_ref, cnt_ref, *, ignore_id, hw, tile):
    s = pl.program_id(1)  # pixel-tile step within this batch element

    @pl.when(s == 0)
    def _():
        loss_ref[...] = jnp.zeros_like(loss_ref)
        cnt_ref[...] = jnp.zeros_like(cnt_ref)

    x = pred_ref[...].astype(jnp.float32)   # (C, TILE) logits, classes on sublanes
    t = tgt_ref[...]                        # (1, TILE) int32 class ids

    # numerically-stable logsumexp over the class (sublane) axis, per pixel lane
    m = jnp.max(x, axis=0, keepdims=True)                                   # (1, TILE)
    lse = jnp.log(jnp.sum(jnp.exp(x - m), axis=0, keepdims=True)) + m       # (1, TILE)

    # gather x[target] via iota/one-hot compare (no dynamic gather needed);
    # -logp[target] = lse - x[target], so logp is never materialized.
    cls = jax.lax.broadcasted_iota(jnp.int32, x.shape, 0)                   # (C, TILE)
    picked = jnp.sum(jnp.where(cls == t, x, 0.0), axis=0, keepdims=True)    # (1, TILE)

    # validity: not ignore_id AND inside the real pixel range (tail mask).
    pix = s * tile + jax.lax.broadcasted_iota(jnp.int32, t.shape, 1)        # (1, TILE)
    valid = jnp.logical_and(t != ignore_id, pix < hw)                       # (1, TILE)

    # elementwise lane-partial accumulation (VPU only; final reduce in wrapper)
    loss_ref[...] += jnp.where(valid, lse - picked, 0.0)
    cnt_ref[...] += valid.astype(jnp.float32)


def _choose_tile(C, HW, max_block_bytes=4 * 1024 * 1024):
    """Pick a lane-dense pixel tile (multiple of 128) sized for VMEM."""
    if HW % 128 != 0:
        return HW  # full-extent last dim is always legal
    t = (max_block_bytes // (C * 4)) // 128 * 128
    t = max(128, min(8192, t))
    return min(t, HW)


def cross_entropy_loss_pallas(predict, target, *, ignore_id=-1, tile=None):
    """MultiLossFunction(type='CE').forward(predict, target).

    predict: (N, C, H, W) float (f32 or bf16) logits, NCHW as in PyTorch
    target:  (N, H, W) int class ids; ignore_id marks ignored pixels
    returns: scalar float32 mean cross-entropy over non-ignored pixels
    """
    N, C, H, W = predict.shape
    HW = H * W

    # Free reshapes only — no transpose, no padding copy.
    x = predict.reshape(N, C, HW)
    t = target.reshape(N, 1, HW).astype(jnp.int32)

    if tile is None:
        tile = _choose_tile(C, HW)
    else:
        if HW % 128 == 0:
            tile = max(128, min((tile // 128) * 128, HW))
        else:
            tile = HW
    n_steps = pl.cdiv(HW, tile)

    kernel = functools.partial(_ce_kernel, ignore_id=ignore_id, hw=HW, tile=tile)

    loss_part, cnt_part = pl.pallas_call(
        kernel,
        out_shape=(
            jax.ShapeDtypeStruct((N, 1, tile), jnp.float32),  # per-batch lane partial loss
            jax.ShapeDtypeStruct((N, 1, tile), jnp.float32),  # per-batch lane partial count
        ),
        grid_spec=pltpu.PrefetchScalarGridSpec(
            num_scalar_prefetch=0,
            grid=(N, n_steps),
            in_specs=[
                pl.BlockSpec((None, C, tile), lambda n, s: (n, 0, s)),
                pl.BlockSpec((None, 1, tile), lambda n, s: (n, 0, s)),
            ],
            out_specs=[
                pl.BlockSpec((None, 1, tile), lambda n, s: (n, 0, 0)),
                pl.BlockSpec((None, 1, tile), lambda n, s: (n, 0, 0)),
            ],
        ),
        compiler_params=pltpu.CompilerParams(
            dimension_semantics=("parallel", "arbitrary"),
        ),
    )(x, t)

    # One small cross-lane / cross-batch reduction + division, done by XLA.
    return jnp.sum(loss_part) / jnp.sum(cnt_part)


def _reference_ce(predict, target, ignore_id=-1):
    N, C, H, W = predict.shape
    x = jnp.transpose(predict, (0, 2, 3, 1)).reshape(-1, C).astype(jnp.float32)
    t = target.reshape(-1).astype(jnp.int32)
    logp = jax.nn.log_softmax(x, axis=-1)
    picked = jnp.take_along_axis(
        logp, jnp.clip(t, 0, C - 1)[:, None], axis=-1)[:, 0]
    valid = t != ignore_id
    return jnp.sum(jnp.where(valid, -picked, 0.0)) / jnp.sum(valid.astype(jnp.float32))


if __name__ == "__main__":
    key = jax.random.PRNGKey(0)
    k1, k2, k3 = jax.random.split(key, 3)

    N, C, H, W = 2, 4, 16, 16
    predict = jax.random.normal(k1, (N, C, H, W), dtype=jnp.float32)
    target = jax.random.randint(k2, (N, H, W), 0, C, dtype=jnp.int32)
    # sprinkle some ignore_index pixels
    ignore_mask = jax.random.uniform(k3, (N, H, W)) < 0.2
    target = jnp.where(ignore_mask, -1, target)

    # tile=128 forces 2 pixel-tile steps per batch element -> exercises the
    # in-kernel accumulation + tail-mask path at this small shape.
    loss = cross_entropy_loss_pallas(predict, target, ignore_id=-1, tile=128)
    loss = jax.block_until_ready(loss)

    ref = _reference_ce(predict, target, ignore_id=-1)
    assert jnp.allclose(loss, ref, rtol=1e-5, atol=1e-5), (loss, ref)

    print("KERNEL_OK")
</pallas_src>

<mosaic_0001>
module attributes {stable_mosaic.version = 11 : i64} {
  func.func @_ce_kernel(%arg0: i32, %arg1: i32, %arg2: memref<1x4x128xf32, #tpu.memory_space<vmem>>, %arg3: memref<1x1x128xi32, #tpu.memory_space<vmem>>, %arg4: memref<1x1x128xf32, #tpu.memory_space<vmem>>, %arg5: memref<1x1x128xf32, #tpu.memory_space<vmem>>) attributes {dimension_semantics = [#tpu.dimension_semantics<parallel>, #tpu.dimension_semantics<arbitrary>], iteration_bounds = array<i64: 2, 2>, scalar_prefetch = 0 : i64, scratch_operands = 0 : i64, tpu.core_type = #tpu.core_type<tc>, window_params = [{transform_indices = @transform_0, window_bounds = array<i64: 1, 4, 128>}, {transform_indices = @transform_1, window_bounds = array<i64: 1, 1, 128>}, {transform_indices = @transform_2, window_bounds = array<i64: 1, 1, 128>}, {transform_indices = @transform_3, window_bounds = array<i64: 1, 1, 128>}]} {
    %c0_i32 = arith.constant 0 : i32
    %0 = arith.cmpi eq, %arg1, %c0_i32 : i32
    %1 = arith.extui %0 : i1 to i32
    %c0_i32_0 = arith.constant 0 : i32
    %2 = arith.cmpi ne, %1, %c0_i32_0 : i32
    scf.if %2 {
      %cst_22 = arith.constant 0.000000e+00 : f32
      %49 = vector.broadcast %cst_22 : f32 to vector<1x128xf32>
      %c0_23 = arith.constant 0 : index
      %c0_24 = arith.constant 0 : index
      %c0_25 = arith.constant 0 : index
      %50 = vector.load %arg4[%c0_23, %c0_24, %c0_25] : memref<1x1x128xf32, #tpu.memory_space<vmem>>, vector<1x1x128xf32>
      %51 = vector.shape_cast %50 : vector<1x1x128xf32> to vector<1x128xf32>
      %52 = vector.shape_cast %49 : vector<1x128xf32> to vector<1x1x128xf32>
      tpu.vector_store %arg4[%c0_23, %c0_24, %c0_25], %52 {strides = array<i32>} : memref<1x1x128xf32, #tpu.memory_space<vmem>>, vector<1x1x128xf32>,
      %cst_26 = arith.constant 0.000000e+00 : f32
      %53 = vector.broadcast %cst_26 : f32 to vector<1x128xf32>
      %c0_27 = arith.constant 0 : index
      %c0_28 = arith.constant 0 : index
      %c0_29 = arith.constant 0 : index
      %54 = vector.load %arg5[%c0_27, %c0_28, %c0_29] : memref<1x1x128xf32, #tpu.memory_space<vmem>>, vector<1x1x128xf32>
      %55 = vector.shape_cast %54 : vector<1x1x128xf32> to vector<1x128xf32>
      %56 = vector.shape_cast %53 : vector<1x128xf32> to vector<1x1x128xf32>
      tpu.vector_store %arg5[%c0_27, %c0_28, %c0_29], %56 {strides = array<i32>} : memref<1x1x128xf32, #tpu.memory_space<vmem>>, vector<1x1x128xf32>,
    } else {
    }
    %c0 = arith.constant 0 : index
    %c0_1 = arith.constant 0 : index
    %c0_2 = arith.constant 0 : index
    %3 = vector.load %arg2[%c0, %c0_1, %c0_2] : memref<1x4x128xf32, #tpu.memory_space<vmem>>, vector<1x4x128xf32>
    %4 = vector.shape_cast %3 : vector<1x4x128xf32> to vector<4x128xf32>
    %c0_3 = arith.constant 0 : index
    %c0_4 = arith.constant 0 : index
    %c0_5 = arith.constant 0 : index
    %5 = vector.load %arg3[%c0_3, %c0_4, %c0_5] : memref<1x1x128xi32, #tpu.memory_space<vmem>>, vector<1x1x128xi32>
    %6 = vector.shape_cast %5 : vector<1x1x128xi32> to vector<1x128xi32>
    %cst = arith.constant dense<0xFF800000> : vector<128xf32>
    %7 = vector.multi_reduction <maximumf>, %4, %cst [0] : vector<4x128xf32> to vector<128xf32>
    %8 = vector.shape_cast %7 : vector<128xf32> to vector<1x128xf32>
    %9 = vector.broadcast %8 : vector<1x128xf32> to vector<4x128xf32>
    %10 = arith.subf %4, %9 : vector<4x128xf32>
    %11 = math.exp %10 : vector<4x128xf32>
    %cst_6 = arith.constant dense<0.000000e+00> : vector<128xf32>
    %12 = vector.multi_reduction <add>, %11, %cst_6 [0] : vector<4x128xf32> to vector<128xf32>
    %13 = vector.shape_cast %12 : vector<128xf32> to vector<1x128xf32>
    %14 = math.log %13 : vector<1x128xf32>
    %15 = arith.addf %14, %8 : vector<1x128xf32>
    %16 = tpu.iota {dimensions = array<i32: 0>} : vector<4x128xi32>
    %17 = vector.broadcast %6 : vector<1x128xi32> to vector<4x128xi32>
    %18 = arith.cmpi eq, %16, %17 : vector<4x128xi32>
    %cst_7 = arith.constant 0.000000e+00 : f32
    %19 = vector.broadcast %cst_7 : f32 to vector<4x128xf32>
    %20 = arith.select %18, %4, %19 : vector<4x128xi1>, vector<4x128xf32>
    %cst_8 = arith.constant dense<0.000000e+00> : vector<128xf32>
    %21 = vector.multi_reduction <add>, %20, %cst_8 [0] : vector<4x128xf32> to vector<128xf32>
    %22 = vector.shape_cast %21 : vector<128xf32> to vector<1x128xf32>
    %c128_i32 = arith.constant 128 : i32
    %23 = arith.muli %arg1, %c128_i32 : i32
    %24 = tpu.iota {dimensions = array<i32: 1>} : vector<1x128xi32>
    %25 = vector.broadcast %23 : i32 to vector<1x128xi32>
    %26 = arith.addi %25, %24 : vector<1x128xi32>
    %c-1_i32 = arith.constant -1 : i32
    %27 = vector.broadcast %c-1_i32 : i32 to vector<1x128xi32>
    %28 = arith.cmpi ne, %6, %27 : vector<1x128xi32>
    %c256_i32 = arith.constant 256 : i32
    %29 = vector.broadcast %c256_i32 : i32 to vector<1x128xi32>
    %30 = arith.cmpi slt, %26, %29 : vector<1x128xi32>
    %31 = arith.andi %28, %30 : vector<1x128xi1>
    %c0_9 = arith.constant 0 : index
    %c0_10 = arith.constant 0 : index
    %c0_11 = arith.constant 0 : index
    %32 = vector.load %arg4[%c0_9, %c0_10, %c0_11] : memref<1x1x128xf32, #tpu.memory_space<vmem>>, vector<1x1x128xf32>
    %33 = vector.shape_cast %32 : vector<1x1x128xf32> to vector<1x128xf32>
    %34 = arith.subf %15, %22 : vector<1x128xf32>
    %cst_12 = arith.constant 0.000000e+00 : f32
    %35 = vector.broadcast %cst_12 : f32 to vector<1x128xf32>
    %36 = arith.select %31, %34, %35 : vector<1x128xi1>, vector<1x128xf32>
    %37 = arith.addf %33, %36 : vector<1x128xf32>
    %c0_13 = arith.constant 0 : index
    %c0_14 = arith.constant 0 : index
    %c0_15 = arith.constant 0 : index
    %38 = vector.load %arg4[%c0_13, %c0_14, %c0_15] : memref<1x1x128xf32, #tpu.memory_space<vmem>>, vector<1x1x128xf32>
    %39 = vector.shape_cast %38 : vector<1x1x128xf32> to vector<1x128xf32>
    %40 = vector.shape_cast %37 : vector<1x128xf32> to vector<1x1x128xf32>
    tpu.vector_store %arg4[%c0_13, %c0_14, %c0_15], %40 {strides = array<i32>} : memref<1x1x128xf32, #tpu.memory_space<vmem>>, vector<1x1x128xf32>,
    %c0_16 = arith.constant 0 : index
    %c0_17 = arith.constant 0 : index
    %c0_18 = arith.constant 0 : index
    %41 = vector.load %arg5[%c0_16, %c0_17, %c0_18] : memref<1x1x128xf32, #tpu.memory_space<vmem>>, vector<1x1x128xf32>
    %42 = vector.shape_cast %41 : vector<1x1x128xf32> to vector<1x128xf32>
    %43 = arith.extui %31 : vector<1x128xi1> to vector<1x128xi32>
    %44 = arith.sitofp %43 : vector<1x128xi32> to vector<1x128xf32>
    %45 = arith.addf %42, %44 : vector<1x128xf32>
    %c0_19 = arith.constant 0 : index
    %c0_20 = arith.constant 0 : index
    %c0_21 = arith.constant 0 : index
    %46 = vector.load %arg5[%c0_19, %c0_20, %c0_21] : memref<1x1x128xf32, #tpu.memory_space<vmem>>, vector<1x1x128xf32>
    %47 = vector.shape_cast %46 : vector<1x1x128xf32> to vector<1x128xf32>
    %48 = vector.shape_cast %45 : vector<1x128xf32> to vector<1x1x128xf32>
    tpu.vector_store %arg5[%c0_19, %c0_20, %c0_21], %48 {strides = array<i32>} : memref<1x1x128xf32, #tpu.memory_space<vmem>>, vector<1x1x128xf32>,
    return
  }
  func.func @transform_0(%arg0: i32, %arg1: i32) -> (i32, i32, i32) {
    %c0_i32 = arith.constant 0 : i32
    %c0_i32_0 = arith.constant 0 : i32
    return %arg0, %c0_i32, %arg1 : i32, i32, i32
  }
  func.func @transform_1(%arg0: i32, %arg1: i32) -> (i32, i32, i32) {
    %c0_i32 = arith.constant 0 : i32
    %c0_i32_0 = arith.constant 0 : i32
    return %arg0, %c0_i32, %arg1 : i32, i32, i32
  }
  func.func @transform_2(%arg0: i32, %arg1: i32) -> (i32, i32, i32) {
    %c0_i32 = arith.constant 0 : i32
    %c0_i32_0 = arith.constant 0 : i32
    %c0_i32_1 = arith.constant 0 : i32
    return %arg0, %c0_i32, %c0_i32_0 : i32, i32, i32
  }
  func.func @transform_3(%arg0: i32, %arg1: i32) -> (i32, i32, i32) {
    %c0_i32 = arith.constant 0 : i32
    %c0_i32_0 = arith.constant 0 : i32
    %c0_i32_1 = arith.constant 0 : i32
    return %arg0, %c0_i32, %c0_i32_0 : i32, i32, i32
  }
}

</mosaic_0001>

<bundles_post_ra>
// kernel: tpu_custom_call.1
= control target key start
LH: loop header
LB: loop body
LE: loop exit
PB: predicated region body
PF: predicated region fallthrough
CT: control target
= control target key end

     0   :  { %s1177_s0 = inlined_call_operand.hbm [shape: f32[2,4,256], index: 0, kind: input, shape index: {}]   ;;  %s1178_s1 = inlined_call_operand.hbm [shape: s32[2,1,256], index: 1, kind: input, shape index: {}]   ;;  %s1179_s2 = inlined_call_operand.hbm [shape: f32[2,1,128], index: 2, kind: output, shape index: {0}]   ;;  %s1180_s3 = inlined_call_operand.hbm [shape: f32[2,1,128], index: 3, kind: output, shape index: {1}]  }
   0x1   :  { %1186 = sst [smem:[#allocation17_spill]] %s1177_s0 }
   0x2   :  { %9 = vsyncpa [#allocation3], 0 }
   0x3   :  { %11 = vsyncpa [#allocation3 + $0x1], 0 }
   0x4   :  { %12 = vsyncpa [#allocation6], 0 }
   0x5   :  { %14 = vsyncpa [#allocation6 + $0x1], 0 }
   0x6   :  { %15 = vsyncpa [#allocation4], 0 }
   0x7   :  { %17 = vsyncpa [#allocation4 + $0x1], 0 }
   0x8   :  { %18 = vsyncpa [#allocation9], 0 }
   0x9   :  { %20 = vsyncpa [#allocation9 + $0x1], 0  ;;  %s852_s12 = smov 0   ;;  %s854_s13 = smov 0  }
   0xa   :  { %s856_s14 = smov 0   ;;  %s858_s15 = smov 0  }
   0xb   :  { %s860_s16 = smov 0   ;;  %s862_s17 = smov 0  }
   0xc   :  { %s864_s18 = smov 0   ;;  %s866_s19 = smov 0  }
   0xd   :  { %s868_s20 = smov 0   ;;  %s870_s21 = smov 0  }
   0xe   :  { %s872_s22 = smov 0  }
   0xf LB: > { %1187 = sst [smem:[#allocation14_spill]] %s820_s21  ;;  %s470_s23 = sadd.s32 4294967295, %s824_s22   ;;  %s824_s22 = sphi %s872_s22, %s26_s22   ;;  %s820_s21 = sphi %s870_s21, %s1207_s21   ;;  %s816_s20 = sphi %s868_s20, %s1215_s20   ;;  %s812_s19 = sphi %s866_s19, %s1205_s19   ;;  %s808_s18 = sphi %s864_s18, %s1214_s18   ;;  %s804_s17 = sphi %s862_s17, %s1213_s17   ;;  %s800_s16 = sphi %s860_s16, %s1212_s16   ;;  %s796_s15 = sphi %s858_s15, %s1211_s15   ;;  %s792_s14 = sphi %s856_s14, %s1210_s14   ;;  %s788_s13 = sphi %s854_s13, %s1209_s13   ;;  %s784_s12 = sphi %s852_s12, %s1208_s12  }
  0x10   : > { %s471_s24 = sadd.s32 4294967294, %s824_s22   ;;  %s35_s25 = sadd.s32 1, %s816_s20 }
  0x11   : > { %s38_s26 = sadd.s32 1, %s820_s21  ;;  %p36_p0 = scmp.ge.s32.totalorder %s35_s25, 2 }
  0x12   : > { %s47_s27 = sadd.s32 1, %s804_s17  ;;  %p54_p1 = scmp.ne.s32.totalorder %s804_s17, %s800_s16 }
  0x13   : > { %p55_p2 = scmp.eq.s32.totalorder %s824_s22, 0  ;;  %s1217_s25 = smov (%p36_p0, %s35_s25), 0 }
  0x14   : > { %1188 = sst [smem:[#allocation15_spill]] %s1217_s25  ;;  %s1219_s26 = smov (!%p36_p0, %s38_s26), %s820_s21 }
  0x15   : > { %s43_s28 = ssub.s32 %s816_s20, %s1217_s25  ;;  %p918_p3 = por %p55_p2, %p54_p1 }
  0x16   : > { %p40_p4 = scmp.ge.s32.totalorder %s1219_s26, 2  ;;  %p60_p5 = scmp.ne.s32.totalorder %s800_s16, %s796_s15 }
  0x17   : > { %p61_p6 = scmp.eq.s32.totalorder %s470_s23, 0  ;;  %s101_s30 = sadd.s32 1, %s792_s14 }
  0x18   : > { %s1221_s26 = smov (%p40_p4, %s1219_s26), 0  ;;  %p111_p8 = scmp.ne.s32.totalorder %s792_s14, %s788_s13 }
  0x19   : > { %1190 = sst [smem:[#allocation16_spill]] %s1221_s26  ;;  %p926_p7 = por %p61_p6, %p60_p5 }
  0x1a   : > { %s42_s5 = ssub.s32 %s820_s21, %s1221_s26  ;;  %p112_p9 = scmp.eq.s32.totalorder %s470_s23, 3 }
  0x1b   : > { %s1191_s4 = scalar_select %p926_p7, 1, 0 }
  0x1c   : > { %s44_s6 = sor.u32 %s43_s28, %s42_s5  ;;  %p99_p10 = scmp.eq.s32.totalorder %s42_s5, 0 }
  0x1d   : > { %p45_p11 = scmp.eq.s32.totalorder %s44_s6, 0  ;;  %p934_p12 = por %p112_p9, %p111_p8 }
  0x1e   : > { %s939_s8 = scalar_select %p99_p10, %s792_s14, %s101_s30  }
  0x1f   : > { %s1192_s7 = scalar_select %p934_p12, 1, 0 }
  0x20   : > { %s942_s9 = scalar_select %p45_p11, %s804_s17, %s47_s27  }
  0x21   : > { %p117_p13 = scmp.ne.s32.totalorder %s788_s13, %s784_s12  ;;  %p118_p0 = scmp.eq.s32.totalorder %s471_s24, 3 }
  0x22   : > { %p510_p1 = scmp.lt.s32.totalorder %s824_s22, 4  ;;  %s952_s11 = sand.u32 1, %s804_s17  }
  0x23   : > { %p947_p2 = por %p118_p0, %p117_p13  ;;  %s474_s15 = sshll.u32 %s952_s11, 2 }
  0x24   : > { %s475_s23 = sshll.u32 %s820_s21, 1  ;;  %s168_s30 = scalar_lea.vmem [#allocation2], %s474_s15 }
  0x25   : > { %s1193_s10 = scalar_select %p947_p2, 1, 0 }
  0x26   : > { %s957_s28 = sadd.s32 %s816_s20, %s475_s23  ;;  %s177_s27 = sshll.u32 %s168_s30, 4  ;;  %s960_s27 = int_to_ptr.vmem [resolvable:$true] %s177_s27 }
  0x27   : > { %s476_s5 = sshll.u32 %s957_s28, 6  ;;  %s1194_s0 = sld [smem:[#allocation17_spill]] }
  0x28   : > { %p969_p4 = pnand %p510_p1, %p918_p3  ;;  %s165_s15 = scalar_lea.sflag [#allocation3], %s952_s11 }
  0x2a   : > { %p608_p9 = pneg %p969_p4 }
  0x2d   : > { %s965_s26 = scalar_lea.hbm %s1194_s0, %s476_s5  ;;  %s611_s5 = scalar_lea.hbm %s1194_s0, 256 }
  0x2e   : > { %s606_s23 = scalar_lea.hbm %s965_s26, 64  ;;  %p612_p3 = scmp.lt.u32.totalorder %s965_s26, %s1194_s0 }
  0x2f   : > { %p607_p8 = scmp.ne.s32.totalorder %s965_s26, %s606_s23  ;;  %p613_p13 = scmp.lt.u32.totalorder %s611_s5, %s606_s23 }
  0x30   : > { %p615_p1 = scmp.lt.u32.totalorder %s606_s23, %s965_s26 }
  0x31   : > { %p609_p10 = pnand %p608_p9, %p607_p8  ;;  %p614_p0 = por %p613_p13, %p612_p3 }
  0x33   : > { %p610_p11 = pneg %p609_p10  ;;  %p616_p5 = por %p615_p1, %p614_p0 }
  0x35   : > { %p617_p6 = pnand %p616_p5, %p610_p11 }
  0x37   : > { %620 = shalt.err (!%p617_p6)
}
  0x38   : > { %s621_s21 = scalar_lea.vmem %s960_s27, 64  ;;  %s826_s29 = smov [#allocation2]  }
  0x39   : > { %p622_p8 = scmp.ne.s32.totalorder %s960_s27, %s621_s21  ;;  %s626_s30 = sshll.u32 %s826_s29, 4  ;;  %s627_s30 = int_to_ptr.vmem [resolvable:$false] %s626_s30 }
  0x3a   : > { %s628_s24 = scalar_lea.vmem %s627_s30, 128  ;;  %p629_p12 = scmp.lt.s32.totalorder %s960_s27, %s627_s30 }
  0x3b   : > { %p624_p10 = pnand %p622_p8, %p608_p9  ;;  %p630_p3 = scmp.lt.s32.totalorder %s628_s24, %s621_s21 }
  0x3d   : > { %p625_p2 = pneg %p624_p10  ;;  %p631_p13 = por %p630_p3, %p629_p12 }
  0x3f   : > { %p632_p0 = pnand %p631_p13, %p625_p2 }
  0x41   : > { %635 = shalt.err (!%p632_p0)
}
  0x42   : > { %499 = dma.hbm_to_vmem [thread:$0]  (!%p969_p4), %s965_s26, 64, %s960_s27, %s165_s15  }
  0x43   : > { %p1196_p5 = scmp.lt.s32.totalorder %s824_s22, 5  ;;  %p1197_p6 = scmp.ge.s32.totalorder %s824_s22, 1 }
  0x44   : > { %s478_s21 = sshll.u32 %s957_s28, 4  ;;  %s187_s5 = scalar_lea.vmem [#allocation5], %s952_s11 }
  0x45   : > { %p1005_p11 = pnand %p1197_p6, %p1196_p5  ;;  %s196_s6 = sshll.u32 %s187_s5, 4  ;;  %s197_s6 = int_to_ptr.vmem [resolvable:$true] %s196_s6 }
  0x46   : > { %s1014_s24 = scalar_lea.hbm %s1178_s1, %s478_s21  ;;  %s185_s26 = scalar_lea.sflag [#allocation6], %s952_s11 }
  0x47   : > { %s1198_s23 = scalar_select %p1005_p11, 1, 0 }
  0x48   : > { %s636_s27 = scalar_lea.hbm %s1014_s24, 16  ;;  %s641_s5 = scalar_lea.hbm %s1178_s1, 64 }
  0x49   : > { %p637_p12 = scmp.ne.s32.totalorder %s1014_s24, %s636_s27  ;;  %p642_p8 = scmp.lt.u32.totalorder %s1014_s24, %s1178_s1 }
  0x4a   : > { %p643_p10 = scmp.lt.u32.totalorder %s641_s5, %s636_s27  ;;  %p645_p13 = scmp.lt.u32.totalorder %s636_s27, %s1014_s24 }
  0x4b   : > { %p639_p2 = pnand %p637_p12, %p608_p9 }
  0x4c   : > { %p644_p3 = por %p643_p10, %p642_p8 }
  0x4d   : > { %p640_p1 = pneg %p639_p2 }
  0x4e   : > { %p646_p0 = por %p645_p13, %p644_p3 }
  0x50   : > { %p647_p5 = pnand %p646_p0, %p640_p1 }
  0x52   : > { %650 = shalt.err (!%p647_p5)
}
  0x53   : > { %s651_s11 = scalar_lea.vmem %s197_s6, 16  ;;  %s827_s21 = smov [#allocation5]  }
  0x54   : > { %p652_p6 = scmp.ne.s32.totalorder %s197_s6, %s651_s11  ;;  %s656_s30 = sshll.u32 %s827_s21, 4  ;;  %s657_s30 = int_to_ptr.vmem [resolvable:$false] %s656_s30 }
  0x55   : > { %s658_s28 = scalar_lea.vmem %s657_s30, 32  ;;  %p659_p7 = scmp.lt.s32.totalorder %s197_s6, %s657_s30 }
  0x56   : > { %p654_p12 = pnand %p652_p6, %p608_p9  ;;  %p660_p11 = scmp.lt.s32.totalorder %s658_s28, %s651_s11 }
  0x58   : > { %p655_p2 = pneg %p654_p12  ;;  %p661_p8 = por %p660_p11, %p659_p7 }
  0x5a   : > { %p662_p10 = pnand %p661_p8, %p655_p2 }
  0x5c   : > { %665 = shalt.err (!%p662_p10)
}
  0x5d   : > { %502 = dma.hbm_to_vmem [thread:$0]  (!%p969_p4), %s1014_s24, 16, %s197_s6, %s185_s26  }
  0x5e   : > { %p1199_p1 = scmp.ne.s32.totalorder %s1198_s23, 0 }
  0x5f   : > { %s207_s0 = sand.u32 (!%p1199_p1), 1, %s800_s16   ;;  %p1200_p9 = scmp.ne.s32.totalorder (!%p1199_p1), %s1191_s4, 0 }
  0x60   : > { %205 = sbr.rel (%p1199_p1) target bundleno = 203 (0xcb), region = 28  ;;  %s480_s27 = sshll.u32 (!%p1199_p1), %s207_s0, 2 }
  0x61   : > { %s208_s15 = scalar_lea.sflag (!%p1199_p1), [#allocation3], %s207_s0  ;;  %s211_s5 = scalar_lea.vmem (!%p1199_p1), [#allocation2], %s480_s27 }
  0x67   : > { %767 = dma.done.wait (%p1200_p9), %s208_s15, 64  }
  0x68   : > { %769 = vsyncadd (%p1200_p9), %s208_s15, 4294967232  ;;  %s217_s29 = scalar_lea.sflag [#allocation6], %s207_s0  ;;  %s219_s11 = scalar_lea.vmem [#allocation5], %s207_s0 }
  0x69   : > { %771 = dma.done.wait (%p1200_p9), %s217_s29, 16  }
  0x6a   : > { %773 = vsyncadd (%p1200_p9), %s217_s29, 4294967280  ;;  %s1048_s25 = sand.u32 1, %s788_s13   ;;  %p481_p7 = scmp.ne.s32.totalorder %s808_s18, 0 }
  0x6b   : > { %s1051_s23 = scalar_lea.vmem [#allocation7], %s1048_s25  ;;  %s1054_s6 = scalar_lea.vmem [#allocation8], %s1048_s25  ;;  %v828_v0 = vmov (!%p481_p7), 0.0  }
  0x6c   : > { %252 = sbr.rel (%p481_p7) target bundleno = 115 (0x73), region = 40  ;;  %253 = vst [vmem:[%s1051_s23] sm:$0x1] (!%p481_p7), %v828_v0  ;;  %254 = vst [vmem:[%s1054_s6] sm:$0x1] (!%p481_p7), %v828_v0 }
  0x73 PF: > { %v255_v1 = vld [vmem:[%s211_s5] sm:$0xf]  ;;  %vm257_vm0 = vcmask 1043456   ;;  %v278_v2 = vlaneseq  ;;  %s482_s4 = sshll.u32 %s808_s18, 7  ;;  %s484_s24 = sshll.u32 %s812_s19, 4  ;;  %v829_v14 = vmov 0.0  }
  0x74   : > { %v258_v3 = vsel %vm257_vm0, %v255_v1, -inf  ;;  %v296_v4 = vstv %s482_s4  ;;  %v256_v7 = vld [vmem:[%s219_s11] sm:$0x1]  ;;  %s341_s26 = sshll.u32 %s1054_s6, 4  ;;  %s1075_s30 = scalar_lea.hbm %s1180_s3, %s484_s24  ;;  %s1077_s26 = int_to_ptr.vmem [resolvable:$true] %s341_s26 }
  0x75   : > { %v259_v5 = vrot.slane %v258_v3, 4  ;;  %v295_v6 = vand.u32 127, %v278_v2  ;;  %vm298_vm1 = vcmp.ne.s32.totalorder %v256_v7, 4294967295  ;;  %v306_v11 = vld [vmem:[%s1054_s6] sm:$0x1]  ;;  %v279_v19 = vshrl.u32 %v278_v2, 7 }
  0x76   : > { %s316_s28 = scalar_lea.sflag [#allocation9], %s1048_s25  ;;  %s666_s0 = scalar_lea.vmem %s1077_s26, 16 }
  0x77   : > { %v260_v8 = vmax.f32 %v258_v3, %v259_v5  ;;  %v297_v9 = vadd.s32 %v296_v4, %v295_v6  ;;  %p667_p4 = scmp.ne.s32.totalorder %s1077_s26, %s666_s0  ;;  %p1203_p11 = scmp.ne.s32.totalorder %s1192_s7, 0 }
  0x78   : > { %s830_s27 = smov [#allocation8]  }
  0x79   : > { %v261_v10 = vrot.slane %v260_v8, 2  ;;  %vm299_vm2 = vcmp.lt.s32.totalorder %v297_v9, 256  ;;  %p668_p3 = pnand %p667_p4, %p1203_p11  ;;  %s670_s15 = sshll.u32 %s830_s27, 4  ;;  %s671_s15 = int_to_ptr.vmem [resolvable:$false] %s670_s15 }
  0x7a   : > { %vm1064_vm3 = vmand %vm298_vm1, %vm299_vm2  ;;  %s672_s5 = scalar_lea.vmem %s671_s15, 32  ;;  %p673_p0 = scmp.lt.s32.totalorder %s1077_s26, %s671_s15 }
  0x7b   : > { %v262_v13 = vmax.f32 %v260_v8, %v261_v10  ;;  %v483_v15 = vsel %vm1064_vm3, 1.0, %v829_v14  ;;  %p669_p13 = pneg %p668_p3  ;;  %p674_p5 = scmp.lt.s32.totalorder %s672_s5, %s666_s0 }
  0x7c   : > { %v309_v16 = vadd.f32 %v483_v15, %v306_v11 }
  0x7d   : > { %v263_v17 = vrot.slane %v262_v13, 1  ;;  %p675_p6 = por %p674_p5, %p673_p0 }
  0x7e   : > { %310 = vst [vmem:[%s1054_s6] sm:$0x1] %v309_v16 }
  0x7f   : > { %v264_v18 = vmax.f32 %v262_v13, %v263_v17  ;;  %p676_p12 = pnand %p675_p6, %p669_p13 }
  0x81   : > { %679 = shalt.err (!%p676_p12)
}
  0x82   : > { %s680_s29 = scalar_lea.hbm %s1075_s30, 16  ;;  %s684_s4 = scalar_lea.hbm %s1180_s3, 32 }
  0x83   : > { %p681_p2 = scmp.ne.s32.totalorder %s1075_s30, %s680_s29  ;;  %p685_p1 = scmp.lt.u32.totalorder %s1075_s30, %s1180_s3 }
  0x84   : > { %p686_p9 = scmp.lt.u32.totalorder %s684_s4, %s680_s29  ;;  %p688_p4 = scmp.lt.u32.totalorder %s680_s29, %s1075_s30 }
  0x85   : > { %p682_p8 = pnand %p681_p2, %p1203_p11 }
  0x86   : > { %p687_p7 = por %p686_p9, %p685_p1 }
  0x87   : > { %p683_p10 = pneg %p682_p8 }
  0x88   : > { %p689_p3 = por %p688_p4, %p687_p7 }
  0x8a   : > { %p690_p13 = pnand %p689_p3, %p683_p10 }
  0x8c   : > { %693 = shalt.err (!%p690_p13)
}
  0x8d   : > { %493 = dma.vmem_to_hbm [thread:$0]  (%p1203_p11), %s1077_s26, 16, %s1075_s30, %s316_s28   ;;  %v265_v20 = vsub.f32 %v255_v1, %v264_v18  ;;  %v282_v22 = vsub.s32 0, %v279_v19  ;;  %v301_v43 = vld [vmem:[%s1051_s23] sm:$0x1] }
  0x8e   : > { %s328_s26 = sshll.u32 %s1051_s23, 4  ;;  %s1113_s0 = scalar_lea.hbm %s1179_s2, %s484_s24  ;;  %s1115_s26 = int_to_ptr.vmem [resolvable:$true] %s328_s26 }
  0x8f   : > { %v266_v21 = vmul.f32 1.442695, %v265_v20  ;;  %v283_v23 = vrot.slane %v256_v7, %v282_v22  ;;  %s312_s27 = scalar_lea.sflag [#allocation4], %s1048_s25  ;;  %s694_s15 = scalar_lea.vmem %s1115_s26, 16 }
  0x90   : > { %p695_p0 = scmp.ne.s32.totalorder %s1115_s26, %s694_s15  ;;  %s831_s5 = smov [#allocation7]  }
  0x91   : > { %602 = vpow2.f32 %v266_v21  ;;  %vm284_vm4 = vcmp.eq.s32.totalorder %v279_v19, %v283_v23  ;;  %s698_s29 = sshll.u32 %s831_s5, 4  ;;  %s699_s29 = int_to_ptr.vmem [resolvable:$false] %s698_s29 }
  0x92   : > { %v285_v24 = vsel %vm284_vm4, %v255_v1, 0.0  ;;  %p696_p5 = pnand %p695_p0, %p1203_p11  ;;  %s700_s19 = scalar_lea.vmem %s699_s29, 32 }
  0x93   : > { %v286_v28 = vsel %vm257_vm0, %v285_v24, 0.0  ;;  %p701_p12 = scmp.lt.s32.totalorder %s1115_s26, %s699_s29  ;;  %p702_p2 = scmp.lt.s32.totalorder %s700_s19, %s694_s15 }
  0x94   : > { %v287_v30 = vrot.slane %v286_v28, 4  ;;  %p697_p6 = pneg %p696_p5 }
  0x95   : > { %p703_p8 = por %p702_p2, %p701_p12 }
  0x96   : > { %v288_v33 = vadd.f32 %v287_v30, %v286_v28 }
  0x97   : > { %p704_p10 = pnand %p703_p8, %p697_p6 }
  0x98   : > { %v289_v36 = vrot.slane %v288_v33, 2 }
  0x9a   : > { %v290_v37 = vadd.f32 %v289_v36, %v288_v33 }
  0x9b   : > { %v603_v25 = vpop.eup %602 }
  0x9c   : > { %v268_v26 = vsel %vm257_vm0, %v603_v25, 0.0  ;;  %v291_v38 = vrot.slane %v290_v37, 1 }
  0x9d   : > { %v269_v27 = vrot.slane %v268_v26, 4 }
  0x9e   : > { %v292_v41 = vadd.f32 %v291_v38, %v290_v37 }
  0x9f   : > { %v270_v29 = vadd.f32 %v269_v27, %v268_v26 }
  0xa1   : > { %v271_v31 = vrot.slane %v270_v29, 2 }
  0xa3   : > { %v272_v32 = vadd.f32 %v271_v31, %v270_v29 }
  0xa5   : > { %v273_v34 = vrot.slane %v272_v32, 1 }
  0xa7   : > { %v274_v35 = vadd.f32 %v273_v34, %v272_v32 }
  0xa9   : > { %604 = vlog2.f32 %v274_v35 }
  0xb3   : > { %v605_v39 = vpop.eup %604 }
  0xb4   : > { %v276_v40 = vmul.f32 0.6931472, %v605_v39 }
  0xb6   : > { %v277_v42 = vadd.f32 %v276_v40, %v264_v18 }
  0xb8   : > { %v302_v44 = vsub.f32 %v277_v42, %v292_v41 }
  0xba   : > { %v303_v45 = vsel %vm1064_vm3, %v302_v44, 0.0 }
  0xbb   : > { %v304_v46 = vadd.f32 %v303_v45, %v301_v43 }
  0xbd   : > { %305 = vst [vmem:[%s1051_s23] sm:$0x1] %v304_v46 }
  0xbe   : > { %707 = shalt.err (!%p704_p10)
}
  0xbf   : > { %s708_s25 = scalar_lea.hbm %s1113_s0, 16  ;;  %s712_s11 = scalar_lea.hbm %s1179_s2, 32 }
  0xc0   : > { %p709_p1 = scmp.ne.s32.totalorder %s1113_s0, %s708_s25  ;;  %p713_p4 = scmp.lt.u32.totalorder %s1113_s0, %s1179_s2 }
  0xc1   : > { %p714_p3 = scmp.lt.u32.totalorder %s712_s11, %s708_s25  ;;  %p716_p0 = scmp.lt.u32.totalorder %s708_s25, %s1113_s0 }
  0xc2   : > { %p710_p9 = pnand %p709_p1, %p1203_p11 }
  0xc3   : > { %p715_p13 = por %p714_p3, %p713_p4 }
  0xc4   : > { %p711_p7 = pneg %p710_p9 }
  0xc5   : > { %p717_p5 = por %p716_p0, %p715_p13 }
  0xc7   : > { %p718_p6 = pnand %p717_p5, %p711_p7 }
  0xc9   : > { %721 = shalt.err (!%p718_p6)
}
  0xca   : > { %492 = dma.vmem_to_hbm [thread:$0]  (%p1203_p11), %s1115_s26, 16, %s1113_s0, %s312_s27  }
  0xcb PF: > { %p511_p12 = scmp.ge.s32.totalorder %s824_s22, 2  ;;  %s353_s18 = sand.u32 1, %s784_s12  }
  0xcc   : > { %p1204_p2 = scmp.ne.s32.totalorder %s1193_s10, 0  ;;  %s354_s21 = scalar_lea.sflag [#allocation4], %s353_s18 }
  0xce   : > { %p504_p8 = pnand %p511_p12, %p1204_p2 }
  0xd0   : > { %775 = dma.done.wait (!%p504_p8), %s354_s21, 16  }
  0xd1   : > { %777 = vsyncadd (!%p504_p8), %s354_s21, 4294967280  ;;  %s362_s30 = scalar_lea.sflag [#allocation9], %s353_s18 }
  0xd2   : > { %779 = dma.done.wait (!%p504_p8), %s362_s30, 16  }
  0xd3   : > { %781 = vsyncadd (!%p504_p8), %s362_s30, 4294967280  ;;  %s26_s22 = sadd.s32 1, %s824_s22   ;;  %s1205_s19 = sld [smem:[#allocation14_spill]] }
  0xd4   : > { %p23_p10 = scmp.ge.s32.totalorder %s26_s22, 6   ;;  %s1206_s7 = sld [smem:[#allocation15_spill]] }
  0xd5   : > { %s1207_s21 = sld [smem:[#allocation16_spill]]  ;;  %s1208_s12 = smov %s788_s13 }
  0xd6   : > { %s1209_s13 = smov %s792_s14  ;;  %s1210_s14 = smov %s939_s8 }
  0xd7   : > { %s1211_s15 = smov %s800_s16  ;;  %s1212_s16 = smov %s804_s17 }
  0xd8   : > { %s1213_s17 = smov %s942_s9  ;;  %s1214_s18 = smov %s816_s20 }
  0xd9   :  { %25 = sbr.rel (!%p23_p10) target bundleno = 15 (0xf), region = 107 }
  0xda   : > { %s1215_s20 = smov %s1206_s7 }
  0xe0   :  { %366 = vsyncpa [#allocation3], 1 }
  0xe1   :  { %368 = vsyncpa [#allocation3 + $0x1], 1 }
  0xe2   :  { %369 = vsyncpa [#allocation6], 1 }
  0xe3   :  { %371 = vsyncpa [#allocation6 + $0x1], 1 }
  0xe4   :  { %372 = vsyncpa [#allocation4], 1 }
  0xe5   :  { %374 = vsyncpa [#allocation4 + $0x1], 1 }
  0xe6   :  { %375 = vsyncpa [#allocation9], 1 }
  0xe7   :  { %377 = vsyncpa [#allocation9 + $0x1], 1 }

</bundles_post_ra>
